<compile_context>
chip_gen: v7x
topology: tpu7x:2x2x1
jax: 0.10.0
libtpu: 0.0.40
codegen_flags: <defaults>
</compile_context>

<pallas_src>
import math

import jax
import jax.numpy as jnp
from jax.experimental import pallas as pl
from jax.experimental.pallas import tpu as pltpu


def _bbox_corner_to_center_kernel(x_ref, o_ref):
    # x_ref: (4, tn) -- rows are [xmin, ymin, xmax, ymax], boxes lane-dense.
    x = x_ref[...]
    mins = x[0:2, :]                 # (2, tn): xmin, ymin
    maxs = x[2:4, :]                 # (2, tn): xmax, ymax
    wh = maxs - mins                 # (width, height)
    centers = (mins + wh) * 0.5      # literal module formula: (xmin + width)/2
    o_ref[0:2, :] = centers          # rows 0,1: x_center, y_center
    o_ref[2:4, :] = wh               # rows 2,3: width, height


def _round_up(a, b):
    return ((a + b - 1) // b) * b


def bbox_corner_to_center(x, *, tn=8192):
    """x: (..., 4) corner boxes [xmin, ymin, xmax, ymax] on the last axis.
    Returns (x_center, y_center, width, height), each shaped (..., 1),
    exactly like the PyTorch module (axis=-1)."""
    assert x.shape[-1] == 4, "last axis must hold [xmin, ymin, xmax, ymax]"
    lead_shape = x.shape[:-1]
    M = math.prod(lead_shape) if lead_shape else 1

    out_dtype = x.dtype if jnp.issubdtype(x.dtype, jnp.floating) else jnp.float32
    compute_dtype = jnp.float32  # keep arithmetic in f32 (v5e: no native bf16 VPU)

    # Flatten boxes, pad M so every tile is a full (4, tn_eff) block (keeps the
    # pipeline deep; avoids the old single-giant-block fallback).
    x2d = x.reshape(M, 4).astype(compute_dtype)
    tn_eff = min(tn, _round_up(M, 128))          # lane multiple, capped at tn
    Mp = _round_up(M, tn_eff)
    if Mp != M:
        x2d = jnp.pad(x2d, ((0, Mp - M), (0, 0)))
    xt = x2d.T                                   # (4, Mp): coords on sublanes

    grid = (Mp // tn_eff,)
    out = pl.pallas_call(
        _bbox_corner_to_center_kernel,
        out_shape=jax.ShapeDtypeStruct((4, Mp), compute_dtype),
        grid_spec=pltpu.PrefetchScalarGridSpec(
            num_scalar_prefetch=0,
            grid=grid,
            in_specs=[pl.BlockSpec((4, tn_eff), lambda i: (0, i))],
            out_specs=pl.BlockSpec((4, tn_eff), lambda i: (0, i)),
        ),
        compiler_params=pltpu.CompilerParams(
            # 'parallel' lets the grid axis shard across v7x's 2 TensorCores;
            # no-op on v5e/v6e.
            dimension_semantics=("parallel",),
        ),
    )(xt)

    res = out.T[:M].reshape(lead_shape + (4,)).astype(out_dtype)
    return (res[..., 0:1], res[..., 1:2], res[..., 2:3], res[..., 3:4])


def _reference(x):
    # Mirrors the PyTorch forward exactly.
    xmin, ymin, xmax, ymax = jnp.split(x, 4, axis=-1)
    width = xmax - xmin
    height = ymax - ymin
    x_center = (xmin + width) / 2.0
    y_center = (ymin + height) / 2.0
    return x_center, y_center, width, height


if __name__ == "__main__":
    key = jax.random.PRNGKey(0)

    # Small shape consistent with module usage: (batch=2, num_boxes=8, 4).
    B, N = 2, 8
    k1, k2 = jax.random.split(key)
    mins = jax.random.uniform(k1, (B, N, 2), dtype=jnp.float32) * 100.0
    sizes = jax.random.uniform(k2, (B, N, 2), dtype=jnp.float32) * 50.0 + 1.0
    x = jnp.concatenate([mins, mins + sizes], axis=-1)  # [xmin, ymin, xmax, ymax]

    xc, yc, w, h = bbox_corner_to_center(x)
    jax.block_until_ready((xc, yc, w, h))

    xc_r, yc_r, w_r, h_r = _reference(x)
    assert xc.shape == (B, N, 1) and yc.shape == (B, N, 1)
    assert w.shape == (B, N, 1) and h.shape == (B, N, 1)
    assert jnp.allclose(xc, xc_r, atol=1e-6)
    assert jnp.allclose(yc, yc_r, atol=1e-6)
    assert jnp.allclose(w, w_r, atol=1e-6)
    assert jnp.allclose(h, h_r, atol=1e-6)

    # Second check: non-multiple box count + multi-block grid (padding path).
    k3, k4 = jax.random.split(k2)
    mins2 = jax.random.uniform(k3, (3, 100, 2), dtype=jnp.float32) * 200.0
    sizes2 = jax.random.uniform(k4, (3, 100, 2), dtype=jnp.float32) * 30.0 + 1.0
    x2 = jnp.concatenate([mins2, mins2 + sizes2], axis=-1)
    outs2 = bbox_corner_to_center(x2, tn=256)  # 300 boxes -> pad to 512, grid=(2,)
    jax.block_until_ready(outs2)
    refs2 = _reference(x2)
    for got, ref in zip(outs2, refs2):
        assert got.shape == (3, 100, 1)
        assert jnp.allclose(got, ref, atol=1e-6)

    print("KERNEL_OK")
</pallas_src>

<mosaic_0001>
module attributes {stable_mosaic.version = 11 : i64} {
  func.func @_bbox_corner_to_center_kernel(%arg0: i32, %arg1: memref<4x128xf32, #tpu.memory_space<vmem>>, %arg2: memref<4x128xf32, #tpu.memory_space<vmem>>) attributes {dimension_semantics = [#tpu.dimension_semantics<parallel>], iteration_bounds = array<i64: 1>, scalar_prefetch = 0 : i64, scratch_operands = 0 : i64, tpu.core_type = #tpu.core_type<tc>, window_params = [{transform_indices = @transform_0, window_bounds = array<i64: 4, 128>}, {transform_indices = @transform_1, window_bounds = array<i64: 4, 128>}]} {
    %c0 = arith.constant 0 : index
    %c0_0 = arith.constant 0 : index
    %0 = vector.load %arg1[%c0, %c0_0] : memref<4x128xf32, #tpu.memory_space<vmem>>, vector<4x128xf32>
    %1 = vector.extract_strided_slice %0 {offsets = [0, 0], sizes = [2, 128], strides = [1, 1]} : vector<4x128xf32> to vector<2x128xf32>
    %2 = vector.extract_strided_slice %0 {offsets = [2, 0], sizes = [2, 128], strides = [1, 1]} : vector<4x128xf32> to vector<2x128xf32>
    %3 = arith.subf %2, %1 : vector<2x128xf32>
    %4 = arith.addf %1, %3 : vector<2x128xf32>
    %cst = arith.constant 5.000000e-01 : f32
    %5 = vector.broadcast %cst : f32 to vector<2x128xf32>
    %6 = arith.mulf %4, %5 : vector<2x128xf32>
    %c0_1 = arith.constant 0 : index
    %c0_2 = arith.constant 0 : index
    %7 = vector.load %arg2[%c0_1, %c0_2] : memref<4x128xf32, #tpu.memory_space<vmem>>, vector<2x128xf32>
    tpu.vector_store %arg2[%c0_1, %c0_2], %6 {strides = array<i32>} : memref<4x128xf32, #tpu.memory_space<vmem>>, vector<2x128xf32>,
    %c2 = arith.constant 2 : index
    %c0_3 = arith.constant 0 : index
    %8 = vector.load %arg2[%c2, %c0_3] : memref<4x128xf32, #tpu.memory_space<vmem>>, vector<2x128xf32>
    tpu.vector_store %arg2[%c2, %c0_3], %3 {strides = array<i32>} : memref<4x128xf32, #tpu.memory_space<vmem>>, vector<2x128xf32>,
    return
  }
  func.func @transform_0(%arg0: i32) -> (i32, i32) {
    %c0_i32 = arith.constant 0 : i32
    %c0_i32_0 = arith.constant 0 : i32
    return %c0_i32, %arg0 : i32, i32
  }
  func.func @transform_1(%arg0: i32) -> (i32, i32) {
    %c0_i32 = arith.constant 0 : i32
    %c0_i32_0 = arith.constant 0 : i32
    return %c0_i32, %arg0 : i32, i32
  }
}

</mosaic_0001>

<bundles_post_ra>
// kernel: tpu_custom_call.1
= control target key start
LH: loop header
LB: loop body
LE: loop exit
PB: predicated region body
PF: predicated region fallthrough
CT: control target
= control target key end

     0   :  { %6 = vsyncpa [#allocation3], 0  ;;  %s134_s0 = inlined_call_operand.hbm [shape: f32[4,128], index: 0, kind: input, shape index: {}]   ;;  %s135_s1 = inlined_call_operand.hbm [shape: f32[4,128], index: 1, kind: output, shape index: {}]  }
   0x1   :  { %7 = vsyncpa [#allocation4], 0  ;;  %s98_s6 = smov [#allocation2]   ;;  %s50_s10 = scalar_lea.hbm %s134_s0, 64 }
   0x2   :  { %s14_s7 = sshll.u32 %s98_s6, 4  ;;  %p51_p0 = scmp.ne.s32.totalorder %s134_s0, %s50_s10  ;;  %s15_s7 = int_to_ptr.vmem [resolvable:$true] %s14_s7 }
   0x3   :  { %p54_p1 = scmp.lt.u32.totalorder %s50_s10, %s134_s0 }
   0x5   :  { %p56_p2 = pnand %p54_p1, %p51_p0 }
   0x7   :  { %59 = shalt.err (!%p56_p2)
}
   0x8   :  { %s60_s15 = scalar_lea.vmem %s15_s7, 64  ;;  %p65_p4 = scmp.lt.s32.totalorder %s15_s7, %s15_s7 }
   0x9   :  { %p61_p3 = scmp.ne.s32.totalorder %s15_s7, %s60_s15  ;;  %p66_p5 = scmp.lt.s32.totalorder %s60_s15, %s60_s15 }
   0xb   :  { %p67_p6 = por %p66_p5, %p65_p4 }
   0xd   :  { %p68_p7 = pnand %p67_p6, %p61_p3 }
   0xf   :  { %71 = shalt.err (!%p68_p7)
}
  0x10   :  { %17 = dma.hbm_to_vmem [thread:$0]  %s134_s0, 64, %s15_s7, [#allocation3]  }
  0x11   :  { %94 = dma.done.wait [#allocation3], 64  }
  0x12   :  { %95 = vsyncadd [#allocation3], 4294967232  ;;  %v21_v0 = vld [vmem:[#allocation2] sm:$0xf]  ;;  %s99_s18 = smov [#allocation5]  }
  0x13   :  { %v23_v1 = vrot.slane %v21_v0, 6  ;;  %s39_s19 = sshll.u32 %s99_s18, 4  ;;  %s40_s19 = int_to_ptr.vmem [resolvable:$true] %s39_s19 }
  0x14   :  { %s72_s20 = scalar_lea.vmem %s40_s19, 64  ;;  %p77_p9 = scmp.lt.s32.totalorder %s40_s19, %s40_s19 }
  0x15   :  { %v25_v2 = vsub.f32 %v21_v0, %v23_v1  ;;  %p73_p8 = scmp.ne.s32.totalorder %s40_s19, %s72_s20  ;;  %p78_p10 = scmp.lt.s32.totalorder %s72_s20, %s72_s20 }
  0x17   :  { %v27_v3 = vrot.slane %v25_v2, 2  ;;  %32 = vst [vmem:[#allocation5] sm:$0xc] %v25_v2  ;;  %p79_p11 = por %p78_p10, %p77_p9 }
  0x19   :  { %v29_v4 = vadd.f32 %v27_v3, %v21_v0  ;;  %p80_p12 = pnand %p79_p11, %p73_p8 }
  0x1b   :  { %v30_v5 = vmul.f32 0.5, %v29_v4 }
  0x1d   :  { %31 = vst [vmem:[#allocation5] sm:$0x3] %v30_v5 }
  0x1e   :  { %83 = shalt.err (!%p80_p12)
}
  0x1f   :  { %s84_s22 = scalar_lea.hbm %s135_s1, 64 }
  0x20   :  { %p85_p13 = scmp.ne.s32.totalorder %s135_s1, %s84_s22  ;;  %p88_p0 = scmp.lt.u32.totalorder %s84_s22, %s135_s1 }
  0x22   :  { %p90_p1 = pnand %p88_p0, %p85_p13 }
  0x24   :  { %93 = shalt.err (!%p90_p1)
}
  0x25   :  { %42 = dma.vmem_to_hbm [thread:$0]  %s40_s19, 64, %s135_s1, [#allocation4]  }
  0x26   :  { %96 = dma.done.wait [#allocation4], 64  }
  0x27   :  { %97 = vsyncadd [#allocation4], 4294967232 }
  0x28   :  { %46 = vsyncpa [#allocation3], 1 }
  0x29   :  { %47 = vsyncpa [#allocation4], 1 }

</bundles_post_ra>
